<compile_context>
chip_gen: v7x
topology: tpu7x:2x2x1
jax: 0.10.0
libtpu: 0.0.40
codegen_flags: <defaults>
</compile_context>

<pallas_src>
import math

import jax
import jax.numpy as jnp
from jax.experimental import pallas as pl
from jax.experimental.pallas import tpu as pltpu

_OUT_LANES = 128    # lane-dense packed output width
_CONST_ROWS = 32    # rows reserved in the weight slab for biases / std / constants
                    # (each constant row sits at an 8-aligned sublane offset)


def _round_up(x, m):
    return (x + m - 1) // m * m


# --------------------------------------------------------------------------- kernel
def _make_policy_kernel(obs, act_dim, obs_pad, tile_b):
    A = act_dim
    rb = obs_pad                 # constants block start (b1 / b2 / bh / std+const rows)
    r2 = obs_pad + _CONST_ROWS   # block-diagonal layer-2 weight
    r3 = r2 + 128                # fused head weight

    def kernel(xin_ref, w_ref, out_ref):
        x = xin_ref[:, 0:obs]                    # [TB, obs]
        noise = xin_ref[:, obs:obs + A]          # [TB, A]

        w1 = w_ref[0:obs, 0:128]                 # [obs, 128]  = [W1a | W1v]
        b1 = w_ref[rb:rb + 1, 0:128]             # [1, 128]
        w2 = w_ref[r2:r2 + 128, :]               # [128, 256]  block-diag(W2a, W2v)
        b2 = w_ref[rb + 8:rb + 9, :]             # [1, 256]
        wh = w_ref[r3:r3 + 256, 0:A + 1]         # [256, A+1]  block(Wmu, W3v)
        bh = w_ref[rb + 16:rb + 17, 0:A + 1]     # [1, A+1]
        std = w_ref[rb + 24:rb + 25, 0:A]        # [1, A]  = exp(logstd)  (precomputed)
        lpc = w_ref[rb + 24:rb + 25, A:A + 1]    # [1, 1]  = -A/2*log(2pi) - sum(logstd)

        # layer 1 (actor & critic fused): [TB, 128] = [h_act | h_val]
        h1 = jnp.tanh(jnp.dot(x, w1, preferred_element_type=jnp.float32) + b1)
        # layer 2 (block-diagonal):        [TB, 256] = [h2_act | h2_val]
        h2 = jnp.tanh(jnp.dot(h1, w2, preferred_element_type=jnp.float32) + b2)
        # fused heads:                     [TB, A+1] = [mean | v]
        head = jnp.dot(h2, wh, preferred_element_type=jnp.float32) + bh

        mean = head[:, 0:A]
        v = head[:, A:A + 1]
        action = mean + std * noise              # torch.normal(mean, std)
        # exact: sum(-(action-mean)^2/(2 var) - 0.5*log(2pi) - logstd) over action dim
        logp = -0.5 * jnp.sum(noise * noise, axis=1, keepdims=True) + lpc

        pad = jnp.zeros((tile_b, _OUT_LANES - (2 * A + 2)), jnp.float32)
        out_ref[...] = jnp.concatenate([action, mean, logp, v, pad], axis=1)

    return kernel


# ---------------------------------------------------------------- parameter packing
def pack_policy_params(params, obs):
    """Packs every weight/bias/logstd into one lane-aligned f32 slab [R, 256].

    Layout (rows):
      [0, obs)               : [W1a | W1v]               (lanes 0:128)
      rb + 0                 : [b1a | b1v]               (lanes 0:128)
      rb + 8                 : [b2a | b2v]               (lanes 0:256)
      rb + 16                : [bmu | b3v]               (lanes 0:A+1)
      rb + 24                : exp(logstd), logp-const   (lanes 0:A, lane A)
      [r2, r2+128)           : block-diag(W2a, W2v)      (lanes 0:256)
      [r3, r3+256)           : block(Wmu, W3v)           (lanes 0:A+1)
    """
    A = params["bmu"].shape[-1]
    obs_pad = _round_up(max(obs, 8), 8)
    R = obs_pad + _CONST_ROWS + 128 + 256
    slab = jnp.zeros((R, 256), jnp.float32)

    # fused layer-1 weight [obs, 128]
    w1 = jnp.concatenate([params["w1a"], params["w1v"]], axis=1)
    slab = slab.at[0:obs, 0:128].set(w1)

    rb = obs_pad
    slab = slab.at[rb, 0:128].set(
        jnp.concatenate([params["b1a"], params["b1v"]], axis=1)[0])
    slab = slab.at[rb + 8, 0:256].set(
        jnp.concatenate([params["b2a"], params["b2v"]], axis=1)[0])
    slab = slab.at[rb + 16, 0:A + 1].set(
        jnp.concatenate([params["bmu"], params["b3v"]], axis=1)[0])
    logstd = params["logstd"]                                        # [1, A]
    slab = slab.at[rb + 24, 0:A].set(jnp.exp(logstd)[0])
    logp_c = -0.5 * A * jnp.log(2.0 * jnp.pi) - jnp.sum(logstd)
    slab = slab.at[rb + 24, A].set(logp_c)

    # block-diagonal layer-2 weight [128, 256]
    r2 = rb + _CONST_ROWS
    slab = slab.at[r2:r2 + 64, 0:128].set(params["w2a"])
    slab = slab.at[r2 + 64:r2 + 128, 128:256].set(params["w2v"])

    # fused head weight [256, A+1]
    r3 = r2 + 128
    slab = slab.at[r3:r3 + 128, 0:A].set(params["wmu"])
    slab = slab.at[r3 + 128:r3 + 256, A].set(params["w3v"][:, 0])
    return slab


# --------------------------------------------------------------------------- wrapper
def mlp_policy_forward(x, noise, wslab):
    """Fused MLPPolicy forward. Returns (v, action, logprob, mean)."""
    B, obs = x.shape
    A = noise.shape[-1]
    obs_pad = _round_up(max(obs, 8), 8)
    R = obs_pad + _CONST_ROWS + 128 + 256
    assert wslab.shape == (R, 256), "wslab does not match pack_policy_params layout"
    assert 2 * A + 2 <= _OUT_LANES

    # Batch tiling: one lane-dense tile per grid step; "parallel" lets multi-core
    # chips (v7x megacore) split the batch across TensorCores. Weights keep a
    # constant block index so they stay resident in VMEM across steps.
    tile_b = min(128, _round_up(B, 8))
    b_pad = _round_up(B, tile_b)

    xin = jnp.concatenate([x, noise], axis=1)          # [B, obs+A] -> one DMA/step
    if b_pad != B:
        xin = jnp.pad(xin, ((0, b_pad - B), (0, 0)))

    kernel = _make_policy_kernel(obs, A, obs_pad, tile_b)

    out = pl.pallas_call(
        kernel,
        out_shape=jax.ShapeDtypeStruct((b_pad, _OUT_LANES), jnp.float32),
        grid_spec=pltpu.PrefetchScalarGridSpec(
            num_scalar_prefetch=0,
            grid=(b_pad // tile_b,),
            in_specs=[
                pl.BlockSpec((tile_b, obs + A), lambda i: (i, 0)),
                pl.BlockSpec((R, 256), lambda i: (0, 0)),    # resident weight slab
            ],
            out_specs=pl.BlockSpec((tile_b, _OUT_LANES), lambda i: (i, 0)),
        ),
        compiler_params=pltpu.CompilerParams(
            dimension_semantics=("parallel",)),
    )(xin, wslab)

    # Split the lane-dense output slab.
    action = out[:B, 0:A]
    mean = out[:B, A:2 * A]
    logp = out[:B, 2 * A:2 * A + 1]
    v = out[:B, 2 * A + 1:2 * A + 2]
    return v, action, logp, mean


# ------------------------------------------------------------------- initialization
def _init_linear(key, fan_in, fan_out):
    """torch.nn.Linear default init: U(-1/sqrt(fan_in), 1/sqrt(fan_in)).
    Weight returned pre-transposed as [fan_in, fan_out]; bias as [1, fan_out]."""
    bound = 1.0 / math.sqrt(fan_in)
    kw, kb = jax.random.split(key)
    w = jax.random.uniform(kw, (fan_in, fan_out), jnp.float32, -bound, bound)
    b = jax.random.uniform(kb, (1, fan_out), jnp.float32, -bound, bound)
    return w, b


def init_mlp_policy_params(key, obs_space, action_space):
    keys = jax.random.split(key, 6)
    w1a, b1a = _init_linear(keys[0], obs_space, 64)
    w2a, b2a = _init_linear(keys[1], 64, 128)
    wmu, bmu = _init_linear(keys[2], 128, action_space)
    wmu = wmu * 0.1  # self.mu.weight.data.mul_(0.1)
    w1v, b1v = _init_linear(keys[3], obs_space, 64)
    w2v, b2v = _init_linear(keys[4], 64, 128)
    w3v, b3v = _init_linear(keys[5], 128, 1)
    # NOTE: the reference calls value_fc3.weight.data.mul(0.1) (NOT in-place),
    # so value_fc3's weight is intentionally left unscaled here to match.
    logstd = jnp.zeros((1, action_space), jnp.float32)  # nn.Parameter(torch.zeros(A))
    return dict(
        w1a=w1a, b1a=b1a, w2a=w2a, b2a=b2a, wmu=wmu, bmu=bmu, logstd=logstd,
        w1v=w1v, b1v=b1v, w2v=w2v, b2v=b2v, w3v=w3v, b3v=b3v,
    )


if __name__ == "__main__":
    OBS, ACT, BATCH = 24, 4, 8  # BipedalWalker-like sizes

    key = jax.random.PRNGKey(0)
    k_params, k_x, k_noise = jax.random.split(key, 3)

    params = init_mlp_policy_params(k_params, OBS, ACT)
    wslab = pack_policy_params(params, OBS)   # pack once; reuse across steps

    x = jax.random.normal(k_x, (BATCH, OBS), jnp.float32)
    # Standard-normal noise drawn in JAX; kernel forms action = mean + std * noise.
    # TODO(synk): optionally draw noise in-kernel with pltpu.prng_seed/prng_random_bits.
    noise = jax.random.normal(k_noise, (BATCH, ACT), jnp.float32)

    v, action, logprob, mean = mlp_policy_forward(x, noise, wslab)
    jax.block_until_ready((v, action, logprob, mean))

    # Pure-JAX reference of the same math (unfused, original log-density form).
    def ref_forward(x, noise, p):
        h = jnp.tanh(x @ p["w1a"] + p["b1a"])
        h = jnp.tanh(h @ p["w2a"] + p["b2a"])
        mean = h @ p["wmu"] + p["bmu"]
        std = jnp.exp(p["logstd"])
        action = mean + std * noise
        hv = jnp.tanh(x @ p["w1v"] + p["b1v"])
        hv = jnp.tanh(hv @ p["w2v"] + p["b2v"])
        v = hv @ p["w3v"] + p["b3v"]
        ld = (-jnp.square(action - mean) / (2.0 * std * std)
              - 0.5 * jnp.log(2.0 * jnp.pi) - p["logstd"])
        logp = jnp.sum(ld, axis=1, keepdims=True)
        return v, action, logp, mean

    rv, ra, rl, rm = ref_forward(x, noise, params)
    assert bool(jnp.allclose(v, rv, atol=2e-5)), "value mismatch"
    assert bool(jnp.allclose(action, ra, atol=2e-5)), "action mismatch"
    assert bool(jnp.allclose(logprob, rl, atol=2e-5)), "logprob mismatch"
    assert bool(jnp.allclose(mean, rm, atol=2e-5)), "mean mismatch"

    print("KERNEL_OK")
</pallas_src>

<mosaic_0001>
module attributes {stable_mosaic.version = 11 : i64} {
  func.func @kernel(%arg0: i32, %arg1: memref<8x28xf32, #tpu.memory_space<vmem>>, %arg2: memref<440x256xf32, #tpu.memory_space<vmem>>, %arg3: memref<8x128xf32, #tpu.memory_space<vmem>>) attributes {dimension_semantics = [#tpu.dimension_semantics<parallel>], iteration_bounds = array<i64: 1>, scalar_prefetch = 0 : i64, scratch_operands = 0 : i64, tpu.core_type = #tpu.core_type<tc>, window_params = [{transform_indices = @transform_0, window_bounds = array<i64: 8, 28>}, {pipeline_mode = #tpu.pipeline_mode<synchronous>, transform_indices = @transform_1, window_bounds = array<i64: 440, 256>}, {transform_indices = @transform_2, window_bounds = array<i64: 8, 128>}]} {
    %c0 = arith.constant 0 : index
    %c0_0 = arith.constant 0 : index
    %0 = vector.load %arg1[%c0, %c0_0] : memref<8x28xf32, #tpu.memory_space<vmem>>, vector<8x24xf32>
    %c0_1 = arith.constant 0 : index
    %c24 = arith.constant 24 : index
    %1 = vector.load %arg1[%c0_1, %c24] : memref<8x28xf32, #tpu.memory_space<vmem>>, vector<8x4xf32>
    %c0_2 = arith.constant 0 : index
    %c0_3 = arith.constant 0 : index
    %2 = vector.load %arg2[%c0_2, %c0_3] : memref<440x256xf32, #tpu.memory_space<vmem>>, vector<24x128xf32>
    %c24_4 = arith.constant 24 : index
    %c0_5 = arith.constant 0 : index
    %3 = vector.load %arg2[%c24_4, %c0_5] : memref<440x256xf32, #tpu.memory_space<vmem>>, vector<1x128xf32>
    %c56 = arith.constant 56 : index
    %c0_6 = arith.constant 0 : index
    %4 = vector.load %arg2[%c56, %c0_6] : memref<440x256xf32, #tpu.memory_space<vmem>>, vector<128x256xf32>
    %c32 = arith.constant 32 : index
    %c0_7 = arith.constant 0 : index
    %5 = vector.load %arg2[%c32, %c0_7] : memref<440x256xf32, #tpu.memory_space<vmem>>, vector<1x256xf32>
    %c184 = arith.constant 184 : index
    %c0_8 = arith.constant 0 : index
    %6 = vector.load %arg2[%c184, %c0_8] : memref<440x256xf32, #tpu.memory_space<vmem>>, vector<256x5xf32>
    %c40 = arith.constant 40 : index
    %c0_9 = arith.constant 0 : index
    %7 = vector.load %arg2[%c40, %c0_9] : memref<440x256xf32, #tpu.memory_space<vmem>>, vector<1x5xf32>
    %c48 = arith.constant 48 : index
    %c0_10 = arith.constant 0 : index
    %8 = vector.load %arg2[%c48, %c0_10] : memref<440x256xf32, #tpu.memory_space<vmem>>, vector<1x4xf32>
    %c48_11 = arith.constant 48 : index
    %c4 = arith.constant 4 : index
    %9 = vector.load %arg2[%c48_11, %c4] : memref<440x256xf32, #tpu.memory_space<vmem>>, vector<1x1xf32>
    %cst = arith.constant dense<0.000000e+00> : vector<8x128xf32>
    %10 = tpu.matmul %0, %2, %cst {dimension_numbers = #tpu.dot_dimension_numbers<[1], [0], [0], [1], [0, 0, 1, 1], [], []>} : vector<8x24xf32>, vector<24x128xf32>, vector<8x128xf32> -> vector<8x128xf32>
    %11 = vector.broadcast %3 : vector<1x128xf32> to vector<8x128xf32>
    %12 = arith.addf %10, %11 : vector<8x128xf32>
    %13 = math.tanh %12 : vector<8x128xf32>
    %cst_12 = arith.constant dense<0.000000e+00> : vector<8x256xf32>
    %14 = tpu.matmul %13, %4, %cst_12 {dimension_numbers = #tpu.dot_dimension_numbers<[1], [0], [0], [1], [0, 0, 1, 1], [], []>} : vector<8x128xf32>, vector<128x256xf32>, vector<8x256xf32> -> vector<8x256xf32>
    %15 = vector.broadcast %5 : vector<1x256xf32> to vector<8x256xf32>
    %16 = arith.addf %14, %15 : vector<8x256xf32>
    %17 = math.tanh %16 : vector<8x256xf32>
    %cst_13 = arith.constant dense<0.000000e+00> : vector<8x5xf32>
    %18 = tpu.matmul %17, %6, %cst_13 {dimension_numbers = #tpu.dot_dimension_numbers<[1], [0], [0], [1], [0, 0, 1, 1], [], []>} : vector<8x256xf32>, vector<256x5xf32>, vector<8x5xf32> -> vector<8x5xf32>
    %19 = vector.broadcast %7 : vector<1x5xf32> to vector<8x5xf32>
    %20 = arith.addf %18, %19 : vector<8x5xf32>
    %21 = vector.extract_strided_slice %20 {offsets = [0, 0], sizes = [8, 4], strides = [1, 1]} : vector<8x5xf32> to vector<8x4xf32>
    %22 = vector.extract_strided_slice %20 {offsets = [0, 4], sizes = [8, 1], strides = [1, 1]} : vector<8x5xf32> to vector<8x1xf32>
    %23 = vector.broadcast %8 : vector<1x4xf32> to vector<8x4xf32>
    %24 = arith.mulf %23, %1 : vector<8x4xf32>
    %25 = arith.addf %21, %24 : vector<8x4xf32>
    %26 = arith.mulf %1, %1 : vector<8x4xf32>
    %cst_14 = arith.constant dense<0.000000e+00> : vector<8xf32>
    %27 = vector.multi_reduction <add>, %26, %cst_14 [1] : vector<8x4xf32> to vector<8xf32>
    %28 = vector.shape_cast %27 : vector<8xf32> to vector<8x1xf32>
    %cst_15 = arith.constant -5.000000e-01 : f32
    %29 = vector.broadcast %cst_15 : f32 to vector<8x1xf32>
    %30 = arith.mulf %29, %28 : vector<8x1xf32>
    %31 = vector.broadcast %9 : vector<1x1xf32> to vector<8x1xf32>
    %32 = arith.addf %30, %31 : vector<8x1xf32>
    %cst_16 = arith.constant 0.000000e+00 : f32
    %33 = vector.broadcast %cst_16 : f32 to vector<8x118xf32>
    %34 = tpu.concatenate %25, %21, %32, %22, %33 in 1 : vector<8x4xf32>, vector<8x4xf32>, vector<8x1xf32>, vector<8x1xf32>, vector<8x118xf32> -> vector<8x128xf32>
    %c0_17 = arith.constant 0 : index
    %c0_18 = arith.constant 0 : index
    %35 = vector.load %arg3[%c0_17, %c0_18] : memref<8x128xf32, #tpu.memory_space<vmem>>, vector<8x128xf32>
    tpu.vector_store %arg3[%c0_17, %c0_18], %34 {strides = array<i32>} : memref<8x128xf32, #tpu.memory_space<vmem>>, vector<8x128xf32>,
    return
  }
  func.func @transform_0(%arg0: i32) -> (i32, i32) {
    %c0_i32 = arith.constant 0 : i32
    %c0_i32_0 = arith.constant 0 : i32
    return %arg0, %c0_i32 : i32, i32
  }
  func.func @transform_1(%arg0: i32) -> (i32, i32) {
    %c0_i32 = arith.constant 0 : i32
    %c0_i32_0 = arith.constant 0 : i32
    %c0_i32_1 = arith.constant 0 : i32
    return %c0_i32, %c0_i32_0 : i32, i32
  }
  func.func @transform_2(%arg0: i32) -> (i32, i32) {
    %c0_i32 = arith.constant 0 : i32
    %c0_i32_0 = arith.constant 0 : i32
    return %arg0, %c0_i32 : i32, i32
  }
}

</mosaic_0001>

<bundles_post_ra>
// kernel: tpu_custom_call.1
= control target key start
LH: loop header
LB: loop body
LE: loop exit
PB: predicated region body
PF: predicated region fallthrough
CT: control target
= control target key end

     0   :  { %7 = vsyncpa [#allocation3], 0  ;;  %s667_s0 = inlined_call_operand.hbm [shape: f32[8,28], index: 0, kind: input, shape index: {}]   ;;  %s668_s1 = inlined_call_operand.hbm [shape: f32[440,256], index: 1, kind: input, shape index: {}]   ;;  %s669_s2 = inlined_call_operand.hbm [shape: f32[8,128], index: 2, kind: output, shape index: {}]  }
   0x1   :  { %8 = vsyncpa [#allocation6], 0 }
   0x2   :  { %9 = vsyncpa [#allocation4], 0  ;;  %s596_s9 = smov [#allocation2]   ;;  %s597_s11 = smov [#allocation5]  }
   0x3   :  { %s16_s10 = sshll.u32 %s596_s9, 4  ;;  %s25_s12 = sshll.u32 %s597_s11, 4  ;;  %s17_s10 = int_to_ptr.vmem [resolvable:$true] %s16_s10  ;;  %s622_s12 = int_to_ptr.vmem [resolvable:$true] %s25_s12 }
   0x4   :  { %s524_s15 = scalar_lea.hbm %s667_s0, 128 }
   0x5   :  { %p525_p0 = scmp.ne.s32.totalorder %s667_s0, %s524_s15  ;;  %p528_p1 = scmp.lt.u32.totalorder %s524_s15, %s667_s0 }
   0x7   :  { %p530_p2 = pnand %p528_p1, %p525_p0 }
   0x9   :  { %533 = shalt.err (!%p530_p2)
}
   0xa   :  { %s534_s20 = scalar_lea.vmem %s17_s10, 128  ;;  %p539_p4 = scmp.lt.s32.totalorder %s17_s10, %s17_s10 }
   0xb   :  { %p535_p3 = scmp.ne.s32.totalorder %s17_s10, %s534_s20  ;;  %p540_p5 = scmp.lt.s32.totalorder %s534_s20, %s534_s20 }
   0xd   :  { %p541_p6 = por %p540_p5, %p539_p4 }
   0xf   :  { %p542_p7 = pnand %p541_p6, %p535_p3 }
  0x11   :  { %545 = shalt.err (!%p542_p7)
}
  0x12   :  { %19 = dma.hbm_to_vmem [thread:$0]  %s667_s0, 128, %s17_s10, [#allocation3]  }
  0x13   :  { %s546_s25 = scalar_lea.hbm %s668_s1, 14080 }
  0x14   :  { %p547_p8 = scmp.ne.s32.totalorder %s668_s1, %s546_s25  ;;  %p550_p9 = scmp.lt.u32.totalorder %s546_s25, %s668_s1 }
  0x16   :  { %p552_p10 = pnand %p550_p9, %p547_p8 }
  0x18   :  { %555 = shalt.err (!%p552_p10)
}
  0x19   :  { %s556_s30 = scalar_lea.vmem %s622_s12, 14080  ;;  %p561_p12 = scmp.lt.s32.totalorder %s622_s12, %s622_s12 }
  0x1a   :  { %p557_p11 = scmp.ne.s32.totalorder %s622_s12, %s556_s30  ;;  %p562_p13 = scmp.lt.s32.totalorder %s556_s30, %s556_s30 }
  0x1c   :  { %p563_p0 = por %p562_p13, %p561_p12 }
  0x1e   :  { %p564_p1 = pnand %p563_p0, %p557_p11 }
  0x20   :  { %567 = shalt.err (!%p564_p1)
}
  0x21   :  { %s598_s0 = smov 256   ;;  %s599_s3 = smov 16  }
  0x22   :  { %31 = dma.hbm_to_vmem [thread:$0]  %s668_s1, 14080, %s622_s12, [#allocation6], %s598_s0, %s598_s0, %s599_s3  }
  0x23   :  { %590 = dma.done.wait [#allocation3], 128  }
  0x24   :  { %591 = vsyncadd [#allocation3], 4294967168 }
  0x25   :  { %592 = dma.done.wait [#allocation6], 14080  }
  0x26   :  { %593 = vsyncadd [#allocation6], 4294953216  ;;  %v600_v0 = vmov 0.0|0.0   ;;  %vm601_vm0 = vmmov 0   ;;  %v602_v1 = vmov 0.0   ;;  %v39_v2 = vld [vmem:[#allocation5] sm:$0xff] }
  0x27   :  { %440 = vmatprep.subr.bf16.mxu0 %v600_v0  ;;  %437 = vmatprep.mubr.msk.f32.mxu0 %vm601_vm0, %v602_v1  ;;  %v40_v3 = vld [vmem:[#allocation5 + $0x10] sm:$0xff]  ;;  %v44_v5 = vld [vmem:[#allocation5 + $0x78] sm:$0xff]  ;;  %v46_v6 = vld [vmem:[#allocation5 + $0x88] sm:$0xff]  ;;  %vm111_vm1 = vcmask 195584   ;;  %s603_s1 = smov 104   ;;  %vm350_vm2 = vcmask 31744  }
  0x28   :  { %261 = vmatprep.mubr.f32.mxu1 %v602_v1  ;;  %v441_v4 = vpack.c.bf16 %v40_v3, %v39_v2  ;;  %v443_v7 = vpack.c.bf16 %v46_v6, %v44_v5  ;;  %v43_v8 = vld [vmem:[#allocation5 + $0x70] sm:$0xff]  ;;  %v45_v9 = vld [vmem:[#allocation5 + $0x80] sm:$0xff]  ;;  %v48_v10 = vld [vmem:[#allocation5 + $0x98] sm:$0xff]  ;;  %s604_s6 = smov 4   ;;  %s605_s7 = smov 5   ;;  %vm368_vm3 = vcmask 64512  }
  0x29   :  { %v445_v11 = vpack.c.bf16 %v45_v9, %v43_v8  ;;  %v50_v12 = vld [vmem:[#allocation5 + $0xa8] sm:$0xff]  ;;  %v47_v13 = vld [vmem:[#allocation5 + $0x90] sm:$0xff]  ;;  %v49_v14 = vld [vmem:[#allocation5 + $0xa0] sm:$0xff]  ;;  %vm370_vm4 = vcmask 72704   ;;  %s606_s8 = smov [#allocation7]   ;;  %vm372_vm5 = vcmask 80896  }
  0x2a   :  { %442 = vmatpush3.bf16.msra.mxu0 %v441_v4  ;;  %v41_v15 = vld [vmem:[#allocation5 + $0x20] sm:$0xff]  ;;  %444 = vmatprep.subr.bf16.mxu1 %v443_v7  ;;  %v447_v16 = vpack.c.bf16 %v50_v12, %v48_v10  ;;  %v52_v17 = vld [vmem:[#allocation5 + $0xb8] sm:$0xff]  ;;  %v54_v18 = vld [vmem:[#allocation5 + $0xc8] sm:$0xff]  ;;  %v449_v20 = vpack.c.bf16 %v49_v14, %v47_v13  ;;  %s381_s9 = sshll.u32 %s606_s8, 4  ;;  %s382_s9 = int_to_ptr.vmem [resolvable:$true] %s381_s9 }
  0x2b   :  { %435 = vmatprep.subr.mxu0 %v602_v1  ;;  %v38_v19 = vld [vmem:[#allocation2] sm:$0xff]  ;;  %446 = vmatpush1.bf16.msra.mxu1 %v445_v11  ;;  %v451_v21 = vpack.c.bf16 %v54_v18, %v52_v17  ;;  %v51_v22 = vld [vmem:[#allocation5 + $0xb0] sm:$0xff]  ;;  %v53_v23 = vld [vmem:[#allocation5 + $0xc0] sm:$0xff]  ;;  %s568_s10 = scalar_lea.vmem %s382_s9, 128  ;;  %p573_p3 = scmp.lt.s32.totalorder %s382_s9, %s382_s9 }
  0x2c   :  { %448 = vmatprep.subr.bf16.mxu1 %v447_v16  ;;  %v56_v24 = vld [vmem:[#allocation5 + $0xd8] sm:$0xff]  ;;  %v58_v25 = vld [vmem:[#allocation5 + $0xe8] sm:$0xff]  ;;  %v453_v26 = vpack.c.bf16 %v53_v23, %v51_v22  ;;  %v55_v28 = vld [vmem:[#allocation5 + $0xd0] sm:$0xff]  ;;  %v345_v55 = vmul.f32 %v38_v19, %v38_v19  ;;  %340 = vrot.lane.b32.xlu1 %v38_v19, %s603_s1  ;;  %p569_p2 = scmp.ne.s32.totalorder %s382_s9, %s568_s10  ;;  %p574_p4 = scmp.lt.s32.totalorder %s568_s10, %s568_s10 }
  0x2d   :  { %v455_v27 = vpack.c.bf16 %v58_v25, %v56_v24  ;;  %v57_v29 = vld [vmem:[#allocation5 + $0xe0] sm:$0xff]  ;;  %v60_v30 = vld [vmem:[#allocation5 + $0xf8] sm:$0xff]  ;;  %v62_v31 = vld [vmem:[#allocation5 + $0x108] sm:$0xff] }
  0x2e   :  { %436 = vmatpush3.msra.mxu0 %v41_v15  ;;  %v457_v32 = vpack.c.bf16 %v57_v29, %v55_v28  ;;  %v459_v33 = vpack.c.bf16 %v62_v31, %v60_v30  ;;  %v59_v34 = vld [vmem:[#allocation5 + $0xf0] sm:$0xff]  ;;  %v61_v35 = vld [vmem:[#allocation5 + $0x100] sm:$0xff]  ;;  %v64_v37 = vld [vmem:[#allocation5 + $0x118] sm:$0xff]  ;;  %347 = vrot.lane.b32.xlu0 %v345_v55, %s603_s1  ;;  %p575_p5 = por %p574_p4, %p573_p3 }
  0x2f   :  { %438 = vmatmul.mubr.msk.f32.vlgmr.msra.gmra.mrb[0].mxu0 %vm111_vm1, %v38_v19  ;;  %450 = vmatpush1.bf16.msra.mxu1 %v449_v20  ;;  %v461_v36 = vpack.c.bf16 %v61_v35, %v59_v34  ;;  %v66_v38 = vld [vmem:[#allocation5 + $0x128] sm:$0xff]  ;;  %v63_v40 = vld [vmem:[#allocation5 + $0x110] sm:$0xff]  ;;  %v65_v41 = vld [vmem:[#allocation5 + $0x120] sm:$0xff] }
  0x30   :  { %452 = vmatprep.subr.bf16.mxu1 %v451_v21  ;;  %v463_v39 = vpack.c.bf16 %v66_v38, %v64_v37  ;;  %v465_v42 = vpack.c.bf16 %v65_v41, %v63_v40  ;;  %v68_v43 = vld [vmem:[#allocation5 + $0x138] sm:$0xff]  ;;  %v70_v44 = vld [vmem:[#allocation5 + $0x148] sm:$0xff]  ;;  %v67_v45 = vld [vmem:[#allocation5 + $0x130] sm:$0xff]  ;;  %p576_p6 = pnand %p575_p5, %p569_p2 }
  0x31   :  { %v467_v46 = vpack.c.bf16 %v70_v44, %v68_v43  ;;  %v69_v47 = vld [vmem:[#allocation5 + $0x140] sm:$0xff]  ;;  %v72_v48 = vld [vmem:[#allocation5 + $0x158] sm:$0xff]  ;;  %v74_v49 = vld [vmem:[#allocation5 + $0x168] sm:$0xff] }
  0x32   :  { %v469_v50 = vpack.c.bf16 %v69_v47, %v67_v45  ;;  %v471_v51 = vpack.c.bf16 %v74_v49, %v72_v48  ;;  %v71_v52 = vld [vmem:[#allocation5 + $0x150] sm:$0xff]  ;;  %v73_v53 = vld [vmem:[#allocation5 + $0x160] sm:$0xff]  ;;  %v187_v47 = vlaneseq }
  0x33   :  { %454 = vmatpush1.bf16.msra.mxu1 %v453_v26  ;;  %v473_v54 = vpack.c.bf16 %v73_v53, %v71_v52  ;;  %v93_v56 = vld [vmem:[#allocation5 + $0x270] sm:$0xff]  ;;  %v94_v57 = vld [vmem:[#allocation5 + $0x280] sm:$0xff] }
  0x34   :  { %456 = vmatprep.subr.bf16.mxu1 %v455_v27  ;;  %v77_v58 = vld [vmem:[#allocation5 + $0x170] sm:$0xff]  ;;  %v475_v59 = vpack.c.bf16 %v94_v57, %v93_v56  ;;  %v78_v60 = vld [vmem:[#allocation5 + $0x180] sm:$0xff]  ;;  %v188_v48 = vshrl.u32 %v187_v47, 7 }
  0x35   :  { %v95_v61 = vld [vmem:[#allocation5 + $0x290] sm:$0xff]  ;;  %v96_v62 = vld [vmem:[#allocation5 + $0x2a0] sm:$0xff]  ;;  %v477_v63 = vpack.c.bf16 %v78_v60, %v77_v58 }
  0x36   :  { %v479_v0 = vpack.c.bf16 %v96_v62, %v95_v61  ;;  %v79_v1 = vld [vmem:[#allocation5 + $0x190] sm:$0xff]  ;;  %v80_v2 = vld [vmem:[#allocation5 + $0x1a0] sm:$0xff]  ;;  %476 = vmatprep.subr.bf16.mxu0 %v475_v59  ;;  %v189_v49 = vsub.s32 0, %v188_v48 }
  0x37   :  { %458 = vmatpush1.bf16.msra.mxu1 %v457_v32  ;;  %v97_v3 = vld [vmem:[#allocation5 + $0x2b0] sm:$0xff]  ;;  %v98_v4 = vld [vmem:[#allocation5 + $0x2c0] sm:$0xff]  ;;  %478 = vmatpush3.bf16.msra.mxu0 %v477_v63  ;;  %v481_v5 = vpack.c.bf16 %v80_v2, %v79_v1 }
  0x38   :  { %460 = vmatprep.subr.bf16.mxu1 %v459_v33  ;;  %480 = vmatprep.subr.bf16.mxu0 %v479_v0  ;;  %v483_v6 = vpack.c.bf16 %v98_v4, %v97_v3  ;;  %v81_v7 = vld [vmem:[#allocation5 + $0x1b0] sm:$0xff]  ;;  %v82_v8 = vld [vmem:[#allocation5 + $0x1c0] sm:$0xff] }
  0x39   :  { %v99_v9 = vld [vmem:[#allocation5 + $0x2d0] sm:$0xff]  ;;  %v100_v10 = vld [vmem:[#allocation5 + $0x2e0] sm:$0xff]  ;;  %v485_v11 = vpack.c.bf16 %v82_v8, %v81_v7 }
  0x3a   :  { %v487_v12 = vpack.c.bf16 %v100_v10, %v99_v9  ;;  %v83_v13 = vld [vmem:[#allocation5 + $0x1d0] sm:$0xff]  ;;  %v84_v14 = vld [vmem:[#allocation5 + $0x1e0] sm:$0xff] }
  0x3b   :  { %462 = vmatpush1.bf16.msra.mxu1 %v461_v36  ;;  %482 = vmatpush3.bf16.msra.mxu0 %v481_v5  ;;  %v489_v15 = vpack.c.bf16 %v84_v14, %v83_v13  ;;  %v42_v16 = vld [vmem:[#allocation5 + $0x30] ss:$0 sm:$0xff]  ;;  %v102_v22 = vld [vmem:[#allocation5 + $0x300] sm:$0xff] }
  0x3c   :  { %464 = vmatprep.subr.bf16.mxu1 %v463_v39  ;;  %484 = vmatprep.subr.bf16.mxu0 %v483_v6  ;;  %v101_v21 = vld [vmem:[#allocation5 + $0x2f0] sm:$0xff]  ;;  %v86_v25 = vld [vmem:[#allocation5 + $0x200] sm:$0xff] }
  0x3d   :  { %v491_v23 = vpack.c.bf16 %v102_v22, %v101_v21  ;;  %v85_v24 = vld [vmem:[#allocation5 + $0x1f0] sm:$0xff]  ;;  %v104_v28 = vld [vmem:[#allocation5 + $0x320] sm:$0xff] }
  0x3e   :  { %v493_v26 = vpack.c.bf16 %v86_v25, %v85_v24  ;;  %v103_v27 = vld [vmem:[#allocation5 + $0x310] sm:$0xff]  ;;  %v88_v31 = vld [vmem:[#allocation5 + $0x220] sm:$0xff] }
  0x3f   :  { %466 = vmatpush1.bf16.msra.mxu1 %v465_v42  ;;  %486 = vmatpush3.bf16.msra.mxu0 %v485_v11  ;;  %v495_v29 = vpack.c.bf16 %v104_v28, %v103_v27  ;;  %v87_v30 = vld [vmem:[#allocation5 + $0x210] sm:$0xff]  ;;  %v106_v34 = vld [vmem:[#allocation5 + $0x340] sm:$0xff] }
  0x40   :  { %468 = vmatprep.subr.bf16.mxu1 %v467_v46  ;;  %488 = vmatprep.subr.bf16.mxu0 %v487_v12  ;;  %v497_v32 = vpack.c.bf16 %v88_v31, %v87_v30  ;;  %v105_v33 = vld [vmem:[#allocation5 + $0x330] sm:$0xff]  ;;  %v90_v37 = vld [vmem:[#allocation5 + $0x240] sm:$0xff] }
  0x41   :  { %v89_v35 = vld [vmem:[#allocation5 + $0x230] sm:$0xff]  ;;  %v499_v36 = vpack.c.bf16 %v106_v34, %v105_v33  ;;  %v108_v39 = vld [vmem:[#allocation5 + $0x360] sm:$0xff] }
  0x42   :  { %v107_v38 = vld [vmem:[#allocation5 + $0x350] sm:$0xff]  ;;  %v501_v40 = vpack.c.bf16 %v90_v37, %v89_v35  ;;  %v92_v43 = vld [vmem:[#allocation5 + $0x260] sm:$0xff] }
  0x43   :  { %470 = vmatpush1.bf16.msra.mxu1 %v469_v50  ;;  %490 = vmatpush3.bf16.msra.mxu0 %v489_v15  ;;  %v503_v41 = vpack.c.bf16 %v108_v39, %v107_v38  ;;  %v91_v42 = vld [vmem:[#allocation5 + $0x250] sm:$0xff]  ;;  %v76_v50 = vld [vmem:[#allocation5 + $0x40] ss:$8 sm:$0x3] }
  0x44   :  { %472 = vmatprep.subr.bf16.mxu1 %v471_v51  ;;  %492 = vmatprep.subr.bf16.mxu0 %v491_v23  ;;  %v505_v44 = vpack.c.bf16 %v92_v43, %v91_v42  ;;  %v193_v51 = vsub.s32 1, %v188_v48  ;;  %v190_v52 = vrot.slane %v76_v50, %v189_v49  ;;  %v110_v62 = vld [vmem:[#allocation5 + $0x60] ss:$0 sm:$0xff]  ;;  %v109_v1 = vld [vmem:[#allocation5 + $0x50] ss:$0 sm:$0xff] }
  0x46   :  { %v194_v53 = vrot.slane %v76_v50, %v193_v51 }
  0x47   :  { %474 = vmatpush1.bf16.msra.mxu1 %v473_v54  ;;  %494 = vmatpush3.bf16.msra.mxu0 %v493_v26 }
  0x48   :  { %496 = vmatprep.subr.bf16.mxu0 %v495_v29 }
  0x4b   :  { %498 = vmatpush3.bf16.msra.mxu0 %v497_v32 }
  0x4c   :  { %500 = vmatprep.subr.bf16.mxu0 %v499_v36 }
  0x4f   :  { %502 = vmatpush3.bf16.msra.mxu0 %v501_v40 }
  0x50   :  { %504 = vmatprep.subr.bf16.mxu0 %v503_v41 }
  0x53   :  { %506 = vmatpush3.bf16.msra.mxu0 %v505_v44 }
  0x9e   :  { %v341_v5 = vpop.permute.xlu1 %340 }
  0x9f   :  { %v343_v7 = vmul.f32 %v341_v5, %v110_v62 }
  0xa0   :  { %v348_v45 = vpop.permute.xlu0 %347 }
  0xa1   :  { %v351_v46 = vsel %vm350_vm2, %v348_v45, 0.0 }
  0xa2   :  { %352 = vadd.xlane.f32.xlu0 %v351_v46 }
 0x102   :  { %v181_v17 = vpop.f32.mrb[0].mxu0 }
 0x103   :  { %v182_v18 = vadd.f32 %v181_v17, %v42_v16  ;;  %v439_v19 = vpop.f32.mrb[1].mxu0 }
 0x105   :  { %518 = vtanh.f32 %v182_v18 }
 0x10f   :  { %v519_v20 = vpop.eup %518 }
 0x110   :  { %262 = vmatmul.mubr.f32.vlgmr.msra.gmra.mrb[0].mxu1 %v519_v20 }
 0x12f   :  { %v353_v60 = vpop.xlane.xlu0 %352 }
 0x130   :  { %v354_v61 = vmul.f32 -0.5, %v353_v60 }
 0x132   :  { %v355_v63 = vadd.f32 %v354_v61, %v110_v62 }
 0x134   :  { %361 = vrot.lane.b32.xlu1 %v355_v63, %s604_s6 }
 0x1a6   :  { %v362_v6 = vpop.permute.xlu1 %361 }
 0x1e3   :  { %v263_v54 = vpop.f32.mrb[0].mxu1 }
 0x1e4   :  { %v264_v55 = vadd.f32 %v263_v54, %v190_v52  ;;  %v265_v56 = vpop.f32.mrb[1].mxu1 }
 0x1e5   :  { %v266_v57 = vadd.f32 %v265_v56, %v194_v53 }
 0x1e7   :  { %520 = vtanh.f32 %v266_v57 }
 0x1e8   :  { %522 = vtanh.f32 %v264_v55 }
 0x1f1   :  { %v521_v58 = vpop.eup %520 }
 0x1f2   :  { %v523_v59 = vpop.eup %522  ;;  %334 = vmatprep.mubr.f32.mxu0 %v521_v58 }
 0x1f3   :  { %335 = vmatmul.mubr.f32.vlgmr.msra.gmra.mrb[2].mxu0 %v523_v59 }
 0x2c6   :  { %v428_v0 = vpop.f32.mrb[2].mxu0 }
 0x2c7   :  { %v429_v2 = vpop.f32.mrb[3].mxu0 }
 0x2c8   :  { %v430_v3 = vadd.f32 %v429_v2, %v428_v0 }
 0x2ca   :  { %v337_v4 = vadd.f32 %v430_v3, %v109_v1 }
 0x2cc   :  { %357 = vrot.lane.b32.xlu1 %v337_v4, %s604_s6  ;;  %v344_v8 = vadd.f32 %v343_v7, %v337_v4 }
 0x2d0   :  { %364 = vrot.lane.b32.xlu1 %v337_v4, %s605_s7 }
 0x33e   :  { %v358_v9 = vpop.permute.xlu1 %357 }
 0x33f   :  { %v367_v10 = vsel %vm350_vm2, %v344_v8, %v358_v9 }
 0x340   :  { %v369_v12 = vsel %vm368_vm3, %v367_v10, %v362_v6 }
 0x342   :  { %v365_v11 = vpop.permute.xlu1 %364 }
 0x343   :  { %v371_v13 = vsel %vm370_vm4, %v369_v12, %v365_v11 }
 0x344   :  { %v373_v14 = vsel %vm372_vm5, %v371_v13, 0.0 }
 0x345   :  { %374 = vst [vmem:[#allocation7] sm:$0xff] %v373_v14 }
 0x346   :  { %579 = shalt.err (!%p576_p6)
}
 0x347   :  { %s580_s13 = scalar_lea.hbm %s669_s2, 128 }
 0x348   :  { %p581_p7 = scmp.ne.s32.totalorder %s669_s2, %s580_s13  ;;  %p584_p8 = scmp.lt.u32.totalorder %s580_s13, %s669_s2 }
 0x34a   :  { %p586_p9 = pnand %p584_p8, %p581_p7 }
 0x34c   :  { %589 = shalt.err (!%p586_p9)
}
 0x34d   :  { %384 = dma.vmem_to_hbm [thread:$0]  %s382_s9, 128, %s669_s2, [#allocation4]  }
 0x34e   :  { %594 = dma.done.wait [#allocation4], 128  }
 0x34f   :  { %595 = vsyncadd [#allocation4], 4294967168 }
 0x350   :  { %388 = vsyncpa [#allocation3], 1 }
 0x351   :  { %389 = vsyncpa [#allocation6], 1 }
 0x352   :  { %390 = vsyncpa [#allocation4], 1 }

</bundles_post_ra>
